<compile_context>
chip_gen: v7x
topology: tpu7x:2x2x1
jax: 0.10.0
libtpu: 0.0.40
codegen_flags: <defaults>
</compile_context>

<pallas_src>
import functools
import math

import jax
import jax.numpy as jnp
from jax import lax
from jax.experimental import pallas as pl
from jax.experimental.pallas import tpu as pltpu

IGNORE = -100000.0
INIT_RANGE = 0.02


# --------------------------- projection matmul kernel ---------------------------

def matmul_bias_kernel(x_ref, w_ref, b_ref, o_ref):
    """o = x @ w + b   (bf16 MXU inputs, f32 accumulate, f32 bias, cast on store)."""
    x = x_ref[...].astype(jnp.bfloat16)
    acc = jnp.dot(x, w_ref[...], preferred_element_type=jnp.float32)
    o_ref[...] = (acc + b_ref[...]).astype(o_ref.dtype)


def _tiled_matmul_bias(x, w, b, out_dtype):
    """x: (M, K) , w: (K, N) bf16, b: (1, N) f32  ->  (M, N) out_dtype."""
    M, K = x.shape
    _, N = w.shape
    if M % 256 == 0:
        tm = 256
    elif M % 128 == 0:
        tm = 128
    else:
        tm = M                      # full-extent block (always legal)
    return pl.pallas_call(
        matmul_bias_kernel,
        out_shape=jax.ShapeDtypeStruct((M, N), out_dtype),
        grid=(M // tm,),
        in_specs=[pl.BlockSpec((tm, K), lambda i: (i, 0)),
                  pl.BlockSpec((K, N), lambda i: (0, 0)),
                  pl.BlockSpec((1, N), lambda i: (0, 0))],
        out_specs=pl.BlockSpec((tm, N), lambda i: (i, 0)),
        compiler_params=pltpu.CompilerParams(
            dimension_semantics=("parallel",)),
    )(x, w, b)


# ----------------------------- flash attention kernel ---------------------------

def flash_attn_kernel(q_ref, k_ref, v_ref, o_ref, m_ref, l_ref, acc_ref,
                      *, tq, tkv, ignore):
    qi = pl.program_id(2)
    ki = pl.program_id(3)
    q0 = qi * tq                      # first query row of this q tile
    k0 = ki * tkv                     # first key column of this kv tile

    @pl.when(ki == 0)
    def _init():
        m_ref[...] = jnp.full(m_ref.shape, -jnp.inf, jnp.float32)
        l_ref[...] = jnp.zeros(l_ref.shape, jnp.float32)
        acc_ref[...] = jnp.zeros(acc_ref.shape, jnp.float32)

    def update(apply_mask):
        q = q_ref[0, 0]               # (tq, dh) bf16, 1/sqrt(dh) already folded in
        k = k_ref[0, 0]               # (tkv, dh) bf16
        # contraction on the last dim of both operands -> no explicit transpose
        s = lax.dot_general(q, k, dimension_numbers=(((1,), (1,)), ((), ())),
                            preferred_element_type=jnp.float32)       # (tq, tkv) f32
        if apply_mask:                # only on diagonal tiles
            row = q0 + lax.broadcasted_iota(jnp.int32, (tq, tkv), 0)
            col = k0 + lax.broadcasted_iota(jnp.int32, (tq, tkv), 1)
            s = jnp.where(col > row, ignore, s)
        m_prev = m_ref[...]
        m_new = jnp.maximum(m_prev, jnp.max(s, axis=-1, keepdims=True))
        alpha = jnp.exp(m_prev - m_new)
        p = jnp.exp(s - m_new)
        l_ref[...] = alpha * l_ref[...] + jnp.sum(p, axis=-1, keepdims=True)
        acc_ref[...] = alpha * acc_ref[...] + jnp.dot(
            p.astype(jnp.bfloat16), v_ref[0, 0], preferred_element_type=jnp.float32)
        m_ref[...] = m_new

    # causal tile classification (scalar grid-index arithmetic)
    tile_fully_masked = k0 > q0 + tq - 1                 # kv tile entirely above diag
    tile_fully_visible = (k0 + tkv - 1) <= q0            # entirely at/below diag
    tile_on_diagonal = jnp.logical_and(jnp.logical_not(tile_fully_masked),
                                       jnp.logical_not(tile_fully_visible))

    @pl.when(tile_fully_visible)
    def _full():
        update(apply_mask=False)

    @pl.when(tile_on_diagonal)
    def _diag():
        update(apply_mask=True)

    @pl.when(ki == pl.num_programs(3) - 1)
    def _finalize():
        o_ref[0, 0] = (acc_ref[...] * pl.reciprocal(l_ref[...], approx=True)
                       ).astype(o_ref.dtype)


# ------------------------------ parameter packing -------------------------------

def pack_attention_params(W_Q, W_K, W_V, W_O, b_Q, b_K, b_V, b_O):
    """One-time weight repack (hoisted off the per-forward path).

    * W_Q/W_K/W_V (H, D, dh) -> one stacked (D, 3*H*dh) bf16 weight (head-major cols)
      so the whole QKV projection is ONE lane-dense MXU matmul.
    * 1/sqrt(d_head) folded into the Q columns and Q bias.
    * W_O (H, dh, D) -> (H*dh, D) bf16 for a single output projection.
    """
    H, D, dh = W_Q.shape
    hdh = H * dh
    scale = 1.0 / math.sqrt(dh)

    def flat(w):                                  # (H, D, dh) -> (D, H*dh)
        return jnp.transpose(w, (1, 0, 2)).reshape(D, hdh)

    w_qkv = jnp.concatenate([flat(W_Q) * scale, flat(W_K), flat(W_V)],
                            axis=1).astype(jnp.bfloat16)          # (D, 3*H*dh)
    b_qkv = jnp.concatenate([b_Q.reshape(1, hdh) * scale,
                             b_K.reshape(1, hdh),
                             b_V.reshape(1, hdh)], axis=1).astype(jnp.float32)
    w_o = W_O.reshape(hdh, D).astype(jnp.bfloat16)                # (H*dh, D)
    b_o = b_O.reshape(1, D).astype(jnp.float32)
    return dict(w_qkv=w_qkv, b_qkv=b_qkv, w_o=w_o, b_o=b_o,
                n_heads=H, d_head=dh, d_model=D)


# ------------------------------- forward wrapper --------------------------------

def attention_forward(resid_pre, params, *, tq=None, tkv=None):
    """resid_pre: (B, S, D) f32.  params: output of pack_attention_params."""
    B, S, D = resid_pre.shape
    H, dh = params["n_heads"], params["d_head"]
    hdh = H * dh
    M = B * S

    # 1) fused QKV projection: one lane-dense matmul, f32 bias add, single bf16 cast.
    qkv = _tiled_matmul_bias(resid_pre.reshape(M, D), params["w_qkv"],
                             params["b_qkv"], jnp.bfloat16)        # (M, 3*H*dh) bf16

    # layout plumbing (XLA reshape/transpose) -> head-major (B, H, S, dh)
    qkv = qkv.reshape(B, S, 3, H, dh).transpose(2, 0, 3, 1, 4)
    q, k, v = qkv[0], qkv[1], qkv[2]

    # 2) flash-style causal attention over (B, H, q_tile, kv_tile).
    if tq is None:
        tq = min(S, 256)              # >=256 keeps the 256-wide MXU fed on v6e/v7x
    if tkv is None:
        tkv = min(S, 256)
    assert S % tq == 0 and S % tkv == 0, "seq must be divisible by the tile sizes"
    nq, nkv = S // tq, S // tkv

    def kv_map(b, h, qi, ki):
        # clamp fully-masked (skipped) kv tiles to the last visible one so the
        # pipeliner never issues DMAs for tiles whose compute is elided.
        last_visible = ((qi + 1) * tq - 1) // tkv
        return (b, h, jnp.minimum(ki, last_visible), 0)

    kernel = functools.partial(flash_attn_kernel, tq=tq, tkv=tkv, ignore=IGNORE)
    z = pl.pallas_call(
        kernel,
        out_shape=jax.ShapeDtypeStruct((B, H, S, dh), jnp.bfloat16),
        grid=(B, H, nq, nkv),
        in_specs=[pl.BlockSpec((1, 1, tq, dh), lambda b, h, qi, ki: (b, h, qi, 0)),
                  pl.BlockSpec((1, 1, tkv, dh), kv_map),
                  pl.BlockSpec((1, 1, tkv, dh), kv_map)],
        out_specs=pl.BlockSpec((1, 1, tq, dh), lambda b, h, qi, ki: (b, h, qi, 0)),
        scratch_shapes=[pltpu.VMEM((tq, 1), jnp.float32),    # running max m
                        pltpu.VMEM((tq, 1), jnp.float32),    # running sum l
                        pltpu.VMEM((tq, dh), jnp.float32)],  # running output acc
        compiler_params=pltpu.CompilerParams(
            dimension_semantics=("parallel", "parallel", "parallel", "arbitrary")),
    )(q, k, v)

    # layout plumbing: (B, H, S, dh) -> (B*S, H*dh), lane-dense for the projection.
    z_flat = z.transpose(0, 2, 1, 3).reshape(M, hdh)

    # 3) fused output projection + bias, f32 output (module semantics).
    out = _tiled_matmul_bias(z_flat, params["w_o"], params["b_o"], jnp.float32)
    return out.reshape(B, S, D)


# --------------------------- pure-JAX reference check ---------------------------

def reference_attention(resid_pre, W_Q, W_K, W_V, W_O, b_Q, b_K, b_V, b_O):
    d_head = W_Q.shape[-1]
    S = resid_pre.shape[1]
    q = jnp.einsum("bsd,hde->bshe", resid_pre, W_Q) + b_Q
    k = jnp.einsum("bsd,hde->bshe", resid_pre, W_K) + b_K
    v = jnp.einsum("bsd,hde->bshe", resid_pre, W_V) + b_V
    scores = jnp.einsum("bqhe,bkhe->bhqk", q, k) / math.sqrt(d_head)
    mask = jnp.arange(S)[None, :] > jnp.arange(S)[:, None]
    scores = jnp.where(mask[None, None], IGNORE, scores)
    probs = jax.nn.softmax(scores, axis=-1)
    z = jnp.einsum("bhqk,bkhe->bqhe", probs, v)
    return jnp.einsum("bqhe,hed->bqd", z, W_O) + b_O


# ------------------------------------ main -------------------------------------

if __name__ == "__main__":
    # small, lane-friendly config consistent with the Attention module
    d_model, n_heads, d_head = 128, 4, 32          # H * d_head == d_model, like GPT-2
    batch, seq = 2, 128
    tq = tkv = 64                                   # exercise multi-tile causal skipping

    key = jax.random.PRNGKey(0)
    ks = jax.random.split(key, 9)

    def normal(k, shape, std=INIT_RANGE):
        return (std * jax.random.normal(k, shape)).astype(jnp.float32)

    W_Q = normal(ks[0], (n_heads, d_model, d_head))
    W_K = normal(ks[1], (n_heads, d_model, d_head))
    W_V = normal(ks[2], (n_heads, d_model, d_head))
    W_O = normal(ks[3], (n_heads, d_head, d_model))
    b_Q = normal(ks[4], (n_heads, d_head))
    b_K = normal(ks[5], (n_heads, d_head))
    b_V = normal(ks[6], (n_heads, d_head))
    b_O = normal(ks[7], (d_model,))
    resid_pre = jax.random.normal(ks[8], (batch, seq, d_model), dtype=jnp.float32)

    # one-time weight repack (off the per-forward path)
    params = pack_attention_params(W_Q, W_K, W_V, W_O, b_Q, b_K, b_V, b_O)

    out = attention_forward(resid_pre, params, tq=tq, tkv=tkv)
    out = jax.block_until_ready(out)
    assert out.shape == (batch, seq, d_model)

    ref = reference_attention(resid_pre, W_Q, W_K, W_V, W_O, b_Q, b_K, b_V, b_O)
    err = float(jnp.max(jnp.abs(out - ref)))
    assert jnp.allclose(out, ref, rtol=2e-2, atol=5e-3), err

    print("KERNEL_OK")
</pallas_src>

<mosaic_0001>
module attributes {stable_mosaic.version = 11 : i64} {
  func.func @matmul_bias_kernel(%arg0: i32, %arg1: memref<256x128xf32, #tpu.memory_space<vmem>>, %arg2: memref<128x384xbf16, #tpu.memory_space<vmem>>, %arg3: memref<1x384xf32, #tpu.memory_space<vmem>>, %arg4: memref<256x384xbf16, #tpu.memory_space<vmem>>) attributes {dimension_semantics = [#tpu.dimension_semantics<parallel>], iteration_bounds = array<i64: 1>, scalar_prefetch = 0 : i64, scratch_operands = 0 : i64, tpu.core_type = #tpu.core_type<tc>, window_params = [{transform_indices = @transform_0, window_bounds = array<i64: 256, 128>}, {pipeline_mode = #tpu.pipeline_mode<synchronous>, transform_indices = @transform_1, window_bounds = array<i64: 128, 384>}, {pipeline_mode = #tpu.pipeline_mode<synchronous>, transform_indices = @transform_2, window_bounds = array<i64: 1, 384>}, {transform_indices = @transform_3, window_bounds = array<i64: 256, 384>}]} {
    %c0 = arith.constant 0 : index
    %c0_0 = arith.constant 0 : index
    %0 = vector.load %arg1[%c0, %c0_0] : memref<256x128xf32, #tpu.memory_space<vmem>>, vector<256x128xf32>
    %1 = arith.truncf %0 : vector<256x128xf32> to vector<256x128xbf16>
    %c0_1 = arith.constant 0 : index
    %c0_2 = arith.constant 0 : index
    %2 = vector.load %arg2[%c0_1, %c0_2] : memref<128x384xbf16, #tpu.memory_space<vmem>>, vector<128x384xbf16>
    %cst = arith.constant dense<0.000000e+00> : vector<256x384xf32>
    %3 = tpu.matmul %1, %2, %cst {dimension_numbers = #tpu.dot_dimension_numbers<[1], [0], [0], [1], [0, 0, 1, 1], [], []>} : vector<256x128xbf16>, vector<128x384xbf16>, vector<256x384xf32> -> vector<256x384xf32>
    %c0_3 = arith.constant 0 : index
    %c0_4 = arith.constant 0 : index
    %4 = vector.load %arg3[%c0_3, %c0_4] : memref<1x384xf32, #tpu.memory_space<vmem>>, vector<1x384xf32>
    %5 = vector.broadcast %4 : vector<1x384xf32> to vector<256x384xf32>
    %6 = arith.addf %3, %5 : vector<256x384xf32>
    %7 = arith.truncf %6 : vector<256x384xf32> to vector<256x384xbf16>
    %c0_5 = arith.constant 0 : index
    %c0_6 = arith.constant 0 : index
    %8 = vector.load %arg4[%c0_5, %c0_6] : memref<256x384xbf16, #tpu.memory_space<vmem>>, vector<256x384xbf16>
    tpu.vector_store %arg4[%c0_5, %c0_6], %7 {strides = array<i32>} : memref<256x384xbf16, #tpu.memory_space<vmem>>, vector<256x384xbf16>,
    return
  }
  func.func @transform_0(%arg0: i32) -> (i32, i32) {
    %c0_i32 = arith.constant 0 : i32
    %c0_i32_0 = arith.constant 0 : i32
    return %arg0, %c0_i32 : i32, i32
  }
  func.func @transform_1(%arg0: i32) -> (i32, i32) {
    %c0_i32 = arith.constant 0 : i32
    %c0_i32_0 = arith.constant 0 : i32
    %c0_i32_1 = arith.constant 0 : i32
    return %c0_i32, %c0_i32_0 : i32, i32
  }
  func.func @transform_2(%arg0: i32) -> (i32, i32) {
    %c0_i32 = arith.constant 0 : i32
    %c0_i32_0 = arith.constant 0 : i32
    %c0_i32_1 = arith.constant 0 : i32
    return %c0_i32, %c0_i32_0 : i32, i32
  }
  func.func @transform_3(%arg0: i32) -> (i32, i32) {
    %c0_i32 = arith.constant 0 : i32
    %c0_i32_0 = arith.constant 0 : i32
    return %arg0, %c0_i32 : i32, i32
  }
}

</mosaic_0001>

<bundles_post_ra>
// kernel: tpu_custom_call.1
= control target key start
LH: loop header
LB: loop body
LE: loop exit
PB: predicated region body
PF: predicated region fallthrough
CT: control target
= control target key end

     0   :  { %8 = vsyncpa [#allocation3], 0  ;;  %s1594_s0 = inlined_call_operand.hbm [shape: f32[256,128], index: 0, kind: input, shape index: {}]   ;;  %s1595_s1 = inlined_call_operand.hbm [shape: bf16[128,384], index: 1, kind: input, shape index: {}]   ;;  %s1596_s2 = inlined_call_operand.vmem [shape: f32[1,384], index: 2, kind: input, shape index: {}]   ;;  %s1597_s3 = inlined_call_operand.hbm [shape: bf16[256,384], index: 3, kind: output, shape index: {}]  }
   0x1   :  { %9 = vsyncpa [#allocation6], 0 }
   0x2   :  { %10 = vsyncpa [#allocation4], 0  ;;  %s1377_s12 = smov [#allocation2]   ;;  %s1305_s16 = scalar_lea.hbm %s1594_s0, 4096 }
   0x3   :  { %s16_s13 = sshll.u32 %s1377_s12, 4  ;;  %p1306_p0 = scmp.ne.s32.totalorder %s1594_s0, %s1305_s16  ;;  %s17_s13 = int_to_ptr.vmem [resolvable:$true] %s16_s13 }
   0x4   :  { %p1309_p1 = scmp.lt.u32.totalorder %s1305_s16, %s1594_s0 }
   0x6   :  { %p1311_p2 = pnand %p1309_p1, %p1306_p0 }
   0x8   :  { %1314 = shalt.err (!%p1311_p2)
}
   0x9   :  { %s1315_s21 = scalar_lea.vmem %s17_s13, 4096  ;;  %p1320_p4 = scmp.lt.s32.totalorder %s17_s13, %s17_s13 }
   0xa   :  { %p1316_p3 = scmp.ne.s32.totalorder %s17_s13, %s1315_s21  ;;  %p1321_p5 = scmp.lt.s32.totalorder %s1315_s21, %s1315_s21 }
   0xc   :  { %p1322_p6 = por %p1321_p5, %p1320_p4 }
   0xe   :  { %p1323_p7 = pnand %p1322_p6, %p1316_p3 }
  0x10   :  { %1326 = shalt.err (!%p1323_p7)
}
  0x11   :  { %s1378_s22 = smov 128   ;;  %s1379_s23 = smov 8  }
  0x12   :  { %22 = dma.hbm_to_vmem [thread:$0]  %s1594_s0, 4096, %s17_s13, [#allocation3], %s1378_s22, %s1378_s22, %s1379_s23  }
  0x13   :  { %s1380_s26 = smov [#allocation5]   ;;  %s1327_s30 = scalar_lea.hbm %s1595_s1, 3072 }
  0x14   :  { %s28_s27 = sshll.u32 %s1380_s26, 4  ;;  %p1328_p8 = scmp.ne.s32.totalorder %s1595_s1, %s1327_s30  ;;  %s29_s27 = int_to_ptr.vmem [resolvable:$true] %s28_s27 }
  0x15   :  { %p1331_p9 = scmp.lt.u32.totalorder %s1327_s30, %s1595_s1 }
  0x17   :  { %p1333_p10 = pnand %p1331_p9, %p1328_p8 }
  0x19   :  { %1336 = shalt.err (!%p1333_p10)
}
  0x1a   :  { %s1337_s8 = scalar_lea.vmem %s29_s27, 3072  ;;  %p1342_p12 = scmp.lt.s32.totalorder %s29_s27, %s29_s27 }
  0x1b   :  { %p1338_p11 = scmp.ne.s32.totalorder %s29_s27, %s1337_s8  ;;  %p1343_p13 = scmp.lt.s32.totalorder %s1337_s8, %s1337_s8 }
  0x1d   :  { %p1344_p0 = por %p1343_p13, %p1342_p12 }
  0x1f   :  { %p1345_p1 = pnand %p1344_p0, %p1338_p11 }
  0x21   :  { %1348 = shalt.err (!%p1345_p1)
}
  0x22   :  { %s1381_s0 = smov 192   ;;  %s1382_s9 = smov 12  }
  0x23   :  { %34 = dma.hbm_to_vmem [thread:$0]  %s1595_s1, 3072, %s29_s27, [#allocation6], %s1381_s0, %s1381_s0, %s1382_s9  }
  0x24   :  { %1371 = dma.done.wait [#allocation3], 4096  }
  0x25   :  { %1372 = vsyncadd [#allocation3], 4294963200 }
  0x26   :  { %1373 = dma.done.wait [#allocation6], 3072  }
  0x27   :  { %1374 = vsyncadd [#allocation6], 4294964224  ;;  %v1383_v0 = vmov 0   ;;  %v1273_v1 = vld [vmem:[#allocation5 + $0x4] ss:$12 sps:$4 sm:$0xff]   ;;  %v45_v18 = vld [vmem:[#allocation2 + $0x8] sm:$0xff] }
  0x28   :  { %301 = vmatprep.mubr.bf16.mxu0 %v1383_v0  ;;  %421 = vmatprep.mubr.bf16.mxu1 %v1383_v0  ;;  %v1275_v2 = vld [vmem:[#allocation5] ss:$12 sps:$4 sm:$0xff]   ;;  %v1276_v3 = vld [vmem:[#allocation5 + $0x1c] ss:$12 sps:$4 sm:$0xff]   ;;  %v1278_v4 = vld [vmem:[#allocation5 + $0x18] ss:$12 sps:$4 sm:$0xff]  }
  0x29   :  { %269 = vmatprep.subr.bf16.mxu0 %v1273_v1  ;;  %1249 = vmatprep.subr.bf16.mxu1 %v1273_v1  ;;  %v1279_v5 = vld [vmem:[#allocation5 + $0x34] ss:$12 sps:$4 sm:$0xff]   ;;  %v1281_v6 = vld [vmem:[#allocation5 + $0x30] ss:$12 sps:$4 sm:$0xff]   ;;  %v1282_v7 = vld [vmem:[#allocation5 + $0x4c] ss:$12 sps:$4 sm:$0xff]  }
  0x2a   :  { %270 = vmatpush1.bf16.msra.mxu0 %v1275_v2  ;;  %1257 = vmatpush1.bf16.msra.mxu1 %v1275_v2  ;;  %v1284_v8 = vld [vmem:[#allocation5 + $0x48] ss:$12 sps:$4 sm:$0xff]   ;;  %v1285_v9 = vld [vmem:[#allocation5 + $0x64] ss:$12 sps:$4 sm:$0xff]   ;;  %v1287_v10 = vld [vmem:[#allocation5 + $0x60] ss:$12 sps:$4 sm:$0xff]  }
  0x2b   :  { %271 = vmatprep.subr.bf16.mxu0 %v1276_v3  ;;  %1250 = vmatprep.subr.bf16.mxu1 %v1276_v3  ;;  %v1288_v11 = vld [vmem:[#allocation5 + $0x7c] ss:$12 sps:$4 sm:$0xff]   ;;  %v1290_v12 = vld [vmem:[#allocation5 + $0x78] ss:$12 sps:$4 sm:$0xff]   ;;  %v1291_v13 = vld [vmem:[#allocation5 + $0x94] ss:$12 sps:$4 sm:$0xff]  }
  0x2c   :  { %v1293_v14 = vld [vmem:[#allocation5 + $0x90] ss:$12 sps:$4 sm:$0xff]   ;;  %v1294_v15 = vld [vmem:[#allocation5 + $0xac] ss:$12 sps:$4 sm:$0xff]   ;;  %v1296_v16 = vld [vmem:[#allocation5 + $0xa8] ss:$12 sps:$4 sm:$0xff]  }
  0x2d   :  { %v44_v17 = vld [vmem:[#allocation2] sm:$0xff]  ;;  %v69_v20 = vld [vmem:[#allocation2 + $0xc8] sm:$0xff]  ;;  %v46_v25 = vld [vmem:[#allocation2 + $0x10] sm:$0xff] }
  0x2e   :  { %272 = vmatpush1.bf16.msra.mxu0 %v1278_v4  ;;  %1258 = vmatpush1.bf16.msra.mxu1 %v1278_v4  ;;  %v68_v19 = vld [vmem:[#allocation2 + $0xc0] sm:$0xff]  ;;  %v1297_v21 = vld [vmem:[#allocation5 + $0x8] ss:$12 sps:$4 sm:$0xff]   ;;  %v76_v22 = vpack.c.bf16 %v45_v18, %v44_v17  ;;  %v47_v26 = vld [vmem:[#allocation2 + $0x18] sm:$0xff] }
  0x2f   :  { %273 = vmatprep.subr.bf16.mxu0 %v1279_v5  ;;  %1251 = vmatprep.subr.bf16.mxu1 %v1279_v5  ;;  %v1434_v23 = vpack.c.bf16 %v69_v20, %v68_v19  ;;  %v1298_v24 = vld [vmem:[#allocation5 + $0x20] ss:$12 sps:$4 sm:$0xff]   ;;  %v70_v27 = vld [vmem:[#allocation2 + $0xd0] sm:$0xff]  ;;  %v71_v28 = vld [vmem:[#allocation2 + $0xd8] sm:$0xff]  ;;  %v77_v30 = vpack.c.bf16 %v47_v26, %v46_v25 }
  0x30   :  { %v1299_v29 = vld [vmem:[#allocation5 + $0x38] ss:$12 sps:$4 sm:$0xff]   ;;  %v1439_v31 = vpack.c.bf16 %v71_v28, %v70_v27  ;;  %v1300_v32 = vld [vmem:[#allocation5 + $0x50] ss:$12 sps:$4 sm:$0xff]   ;;  %v49_v34 = vld [vmem:[#allocation2 + $0x28] sm:$0xff] }
  0x31   :  { %v48_v33 = vld [vmem:[#allocation2 + $0x20] sm:$0xff]  ;;  %v73_v36 = vld [vmem:[#allocation2 + $0xe8] sm:$0xff]  ;;  %v50_v41 = vld [vmem:[#allocation2 + $0x30] sm:$0xff] }
  0x32   :  { %274 = vmatpush1.bf16.msra.mxu0 %v1281_v6  ;;  %1259 = vmatpush1.bf16.msra.mxu1 %v1281_v6  ;;  %v72_v35 = vld [vmem:[#allocation2 + $0xe0] sm:$0xff]  ;;  %v1301_v37 = vld [vmem:[#allocation5 + $0x68] ss:$12 sps:$4 sm:$0xff]   ;;  %v78_v38 = vpack.c.bf16 %v49_v34, %v48_v33  ;;  %v51_v42 = vld [vmem:[#allocation2 + $0x38] sm:$0xff] }
  0x33   :  { %275 = vmatprep.subr.bf16.mxu0 %v1282_v7  ;;  %1252 = vmatprep.subr.bf16.mxu1 %v1282_v7  ;;  %v1444_v39 = vpack.c.bf16 %v73_v36, %v72_v35  ;;  %v1302_v40 = vld [vmem:[#allocation5 + $0x80] ss:$12 sps:$4 sm:$0xff]   ;;  %v74_v43 = vld [vmem:[#allocation2 + $0xf0] sm:$0xff]  ;;  %v75_v44 = vld [vmem:[#allocation2 + $0xf8] sm:$0xff]  ;;  %v79_v46 = vpack.c.bf16 %v51_v42, %v50_v41 }
  0x34   :  { %v1303_v45 = vld [vmem:[#allocation5 + $0x98] ss:$12 sps:$4 sm:$0xff]   ;;  %v1449_v47 = vpack.c.bf16 %v75_v44, %v74_v43  ;;  %v1304_v48 = vld [vmem:[#allocation5 + $0xb0] ss:$12 sps:$4 sm:$0xff]   ;;  %v53_v50 = vld [vmem:[#allocation2 + $0x48] sm:$0xff] }
  0x35   :  { %v52_v49 = vld [vmem:[#allocation2 + $0x40] sm:$0xff]  ;;  %v54_v52 = vld [vmem:[#allocation2 + $0x50] sm:$0xff]  ;;  %v55_v53 = vld [vmem:[#allocation2 + $0x58] sm:$0xff] }
  0x36   :  { %276 = vmatpush1.bf16.msra.mxu0 %v1284_v8  ;;  %1260 = vmatpush1.bf16.msra.mxu1 %v1284_v8  ;;  %v80_v51 = vpack.c.bf16 %v53_v50, %v52_v49  ;;  %v81_v54 = vpack.c.bf16 %v55_v53, %v54_v52  ;;  %v56_v55 = vld [vmem:[#allocation2 + $0x60] sm:$0xff]  ;;  %v57_v56 = vld [vmem:[#allocation2 + $0x68] sm:$0xff]  ;;  %v58_v58 = vld [vmem:[#allocation2 + $0x70] sm:$0xff] }
  0x37   :  { %277 = vmatprep.subr.bf16.mxu0 %v1285_v9  ;;  %1253 = vmatprep.subr.bf16.mxu1 %v1285_v9  ;;  %v82_v57 = vpack.c.bf16 %v57_v56, %v56_v55  ;;  %v59_v59 = vld [vmem:[#allocation2 + $0x78] sm:$0xff]  ;;  %v60_v60 = vld [vmem:[#allocation2 + $0x80] sm:$0xff]  ;;  %v61_v61 = vld [vmem:[#allocation2 + $0x88] sm:$0xff] }
  0x38   :  { %v83_v62 = vpack.c.bf16 %v59_v59, %v58_v58  ;;  %v84_v63 = vpack.c.bf16 %v61_v61, %v60_v60  ;;  %v62_v1 = vld [vmem:[#allocation2 + $0x90] sm:$0xff]  ;;  %v63_v2 = vld [vmem:[#allocation2 + $0x98] sm:$0xff]  ;;  %v64_v3 = vld [vmem:[#allocation2 + $0xa0] sm:$0xff] }
  0x39   :  { %v65_v4 = vld [vmem:[#allocation2 + $0xa8] sm:$0xff]  ;;  %v85_v5 = vpack.c.bf16 %v63_v2, %v62_v1  ;;  %v66_v7 = vld [vmem:[#allocation2 + $0xb0] sm:$0xff]  ;;  %v67_v8 = vld [vmem:[#allocation2 + $0xb8] sm:$0xff] }
  0x3a   :  { %278 = vmatpush1.bf16.msra.mxu0 %v1287_v10  ;;  %1261 = vmatpush1.bf16.msra.mxu1 %v1287_v10  ;;  %v86_v6 = vpack.c.bf16 %v65_v4, %v64_v3  ;;  %v87_v9 = vpack.c.bf16 %v67_v8, %v66_v7  ;;  %v126_v10 = vlaneseq }
  0x3b   :  { %279 = vmatprep.subr.bf16.mxu0 %v1288_v11  ;;  %1254 = vmatprep.subr.bf16.mxu1 %v1288_v11 }
  0x3c   :  { %v1464_v11 = vshrl.u32 %v126_v10, 7 }
  0x3e   :  { %280 = vmatpush1.bf16.msra.mxu0 %v1290_v12  ;;  %1262 = vmatpush1.bf16.msra.mxu1 %v1290_v12  ;;  %v128_v12 = vsub.s32 0, %v1464_v11 }
  0x3f   :  { %281 = vmatprep.subr.bf16.mxu0 %v1291_v13  ;;  %1255 = vmatprep.subr.bf16.mxu1 %v1291_v13  ;;  %v1470_v13 = vld [vmem:[%s1596_s2] sm:$0x7]  ;;  %s1384_s2 = smov [#allocation7]  }
  0x40   :  { %s1012_s13 = sshll.u32 %s1384_s2, 4  ;;  %s1013_s13 = int_to_ptr.vmem [resolvable:$true] %s1012_s13 }
  0x41   :  { %s1349_s14 = scalar_lea.vmem %s1013_s13, 6144  ;;  %p1354_p3 = scmp.lt.s32.totalorder %s1013_s13, %s1013_s13 }
  0x42   :  { %282 = vmatpush1.bf16.msra.mxu0 %v1293_v14  ;;  %1263 = vmatpush1.bf16.msra.mxu1 %v1293_v14  ;;  %v132_v14 = vsub.s32 1, %v1464_v11  ;;  %p1350_p2 = scmp.ne.s32.totalorder %s1013_s13, %s1349_s14  ;;  %p1355_p4 = scmp.lt.s32.totalorder %s1349_s14, %s1349_s14 }
  0x43   :  { %283 = vmatprep.subr.bf16.mxu0 %v1294_v15  ;;  %1256 = vmatprep.subr.bf16.mxu1 %v1294_v15  ;;  %v1474_v15 = vrot.slane %v1470_v13, %v128_v12 }
  0x44   :  { %p1356_p5 = por %p1355_p4, %p1354_p3 }
  0x46   :  { %284 = vmatpush1.bf16.msra.mxu0 %v1296_v16  ;;  %1264 = vmatpush1.bf16.msra.mxu1 %v1296_v16  ;;  %p1357_p6 = pnand %p1356_p5, %p1350_p2 }
  0x47   :  { %1201 = vmatprep.subr.bf16.mxu1 %v1297_v21 }
  0x49   :  { %302 = vmatmul.mubr.bf16.vlgmr.msra.gmra.mrb[0].mxu0 %v76_v22  ;;  %422 = vmatmul.mubr.bf16.vlgmr.msra.gmra.mrb[0].mxu1 %v1434_v23 }
  0x4a   :  { %1202 = vmatpush3.bf16.msra.mxu1 %v1297_v21  ;;  %311 = vmatprep.mubr.bf16.mxu0 %v1383_v0 }
  0x4b   :  { %1203 = vmatprep.subr.bf16.mxu1 %v1298_v24  ;;  %431 = vmatprep.mubr.bf16.mxu1 %v1383_v0 }
  0x4e   :  { %1204 = vmatpush3.bf16.msra.mxu1 %v1298_v24 }
  0x4f   :  { %1205 = vmatprep.subr.bf16.mxu1 %v1299_v29 }
  0x51   :  { %312 = vmatmul.mubr.bf16.gmra.mrb[4].mxu0 %v77_v30  ;;  %432 = vmatmul.mubr.bf16.gmra.mrb[4].mxu1 %v1439_v31 }
  0x52   :  { %1206 = vmatpush3.bf16.msra.mxu1 %v1299_v29  ;;  %321 = vmatprep.mubr.bf16.mxu0 %v1383_v0 }
  0x53   :  { %1207 = vmatprep.subr.bf16.mxu1 %v1300_v32  ;;  %441 = vmatprep.mubr.bf16.mxu1 %v1383_v0 }
  0x56   :  { %1208 = vmatpush3.bf16.msra.mxu1 %v1300_v32 }
  0x57   :  { %1209 = vmatprep.subr.bf16.mxu1 %v1301_v37 }
  0x59   :  { %322 = vmatmul.mubr.bf16.gmra.mrb[8].mxu0 %v78_v38  ;;  %442 = vmatmul.mubr.bf16.gmra.mrb[8].mxu1 %v1444_v39 }
  0x5a   :  { %1210 = vmatpush3.bf16.msra.mxu1 %v1301_v37  ;;  %331 = vmatprep.mubr.bf16.mxu0 %v1383_v0 }
  0x5b   :  { %1211 = vmatprep.subr.bf16.mxu1 %v1302_v40  ;;  %451 = vmatprep.mubr.bf16.mxu1 %v1383_v0 }
  0x5e   :  { %1212 = vmatpush3.bf16.msra.mxu1 %v1302_v40 }
  0x5f   :  { %1213 = vmatprep.subr.bf16.mxu1 %v1303_v45 }
  0x61   :  { %332 = vmatmul.mubr.bf16.gmra.mrb[12].mxu0 %v79_v46  ;;  %452 = vmatmul.mubr.bf16.gmra.mrb[12].mxu1 %v1449_v47 }
  0x62   :  { %1214 = vmatpush3.bf16.msra.mxu1 %v1303_v45  ;;  %341 = vmatprep.mubr.bf16.mxu0 %v1383_v0 }
  0x63   :  { %1215 = vmatprep.subr.bf16.mxu1 %v1304_v48  ;;  %1217 = vmatprep.mubr.bf16.mxu1 %v76_v22 }
  0x66   :  { %1216 = vmatpush3.bf16.msra.mxu1 %v1304_v48 }
  0x69   :  { %342 = vmatmul.mubr.bf16.gmra.mrb[16].mxu0 %v80_v51  ;;  %1218 = vmatmul.mubr.bf16.vlgmr.msra.gmra.mrb[16].mxu1 %v77_v30 }
  0x6a   :  { %351 = vmatprep.mubr.bf16.mxu0 %v1383_v0  ;;  %1221 = vmatprep.mubr.bf16.mxu1 %v78_v38 }
  0x71   :  { %352 = vmatmul.mubr.bf16.gmra.mrb[20].mxu0 %v81_v54  ;;  %1222 = vmatmul.mubr.bf16.gmra.mrb[20].mxu1 %v79_v46 }
  0x72   :  { %361 = vmatprep.mubr.bf16.mxu0 %v1383_v0  ;;  %1225 = vmatprep.mubr.bf16.mxu1 %v80_v51 }
  0x79   :  { %362 = vmatmul.mubr.bf16.gmra.mrb[24].mxu0 %v82_v57  ;;  %1226 = vmatmul.mubr.bf16.gmra.mrb[24].mxu1 %v81_v54 }
  0x7a   :  { %371 = vmatprep.mubr.bf16.mxu0 %v1383_v0  ;;  %1229 = vmatprep.mubr.bf16.mxu1 %v82_v57 }
  0x81   :  { %372 = vmatmul.mubr.bf16.gmra.mrb[28].mxu0 %v83_v62  ;;  %1230 = vmatmul.mubr.bf16.gmra.mrb[28].mxu1 %v83_v62 }
  0x82   :  { %381 = vmatprep.mubr.bf16.mxu0 %v1383_v0  ;;  %1233 = vmatprep.mubr.bf16.mxu1 %v84_v63 }
  0x89   :  { %382 = vmatmul.mubr.bf16.gmra.mrb[32].mxu0 %v84_v63  ;;  %1234 = vmatmul.mubr.bf16.gmra.mrb[32].mxu1 %v85_v5 }
  0x8a   :  { %391 = vmatprep.mubr.bf16.mxu0 %v1383_v0  ;;  %1237 = vmatprep.mubr.bf16.mxu1 %v86_v6 }
  0x91   :  { %392 = vmatmul.mubr.bf16.gmra.mrb[36].mxu0 %v85_v5  ;;  %1238 = vmatmul.mubr.bf16.gmra.mrb[36].mxu1 %v87_v9 }
  0x92   :  { %401 = vmatprep.mubr.bf16.mxu0 %v1383_v0  ;;  %1241 = vmatprep.mubr.bf16.mxu1 %v1434_v23 }
  0x99   :  { %402 = vmatmul.mubr.bf16.gmra.mrb[40].mxu0 %v86_v6  ;;  %1242 = vmatmul.mubr.bf16.gmra.mrb[40].mxu1 %v1439_v31 }
  0x9a   :  { %411 = vmatprep.mubr.bf16.mxu0 %v1383_v0  ;;  %1245 = vmatprep.mubr.bf16.mxu1 %v1444_v39  ;;  %v1477_v0 = vrot.slane %v1470_v13, %v132_v14 }
  0xa1   :  { %412 = vmatmul.mubr.bf16.gmra.mrb[44].mxu0 %v87_v9  ;;  %1246 = vmatmul.mubr.bf16.gmra.mrb[44].mxu1 %v1449_v47 }
 0x11c   :  { %v303_v16 = vpop.f32.mrb[0].mxu0  ;;  %v423_v17 = vpop.f32.mrb[0].mxu1 }
 0x11d   :  { %v304_v18 = vadd.f32 %v303_v16, %v1474_v15  ;;  %v424_v19 = vadd.f32 %v423_v17, %v1474_v15  ;;  %v305_v20 = vpop.f32.mrb[1].mxu0  ;;  %v425_v21 = vpop.f32.mrb[1].mxu1 }
 0x11e   :  { %v306_v22 = vadd.f32 %v305_v20, %v1477_v0  ;;  %v426_v23 = vadd.f32 %v425_v21, %v1477_v0  ;;  %v307_v24 = vpop.f32.mrb[2].mxu0  ;;  %v427_v25 = vpop.f32.mrb[2].mxu1 }
 0x11f   :  { %v308_v26 = vadd.f32 %v307_v24, %v1474_v15  ;;  %v428_v27 = vadd.f32 %v427_v25, %v1474_v15  ;;  %v309_v28 = vpop.f32.mrb[3].mxu0  ;;  %v429_v29 = vpop.f32.mrb[3].mxu1 }
 0x120   :  { %v1113_v30 = vpack.c.bf16 %v306_v22, %v304_v18  ;;  %v1161_v31 = vpack.c.bf16 %v426_v23, %v424_v19  ;;  %v310_v32 = vadd.f32 %v309_v28, %v1477_v0  ;;  %v430_v33 = vadd.f32 %v429_v29, %v1477_v0 }
 0x121   :  { %v136_v22 = vsub.s32 2, %v1464_v11 }
 0x122   :  { %943 = vst [vmem:[#allocation7] sm:$0xff] %v1113_v30  ;;  %991 = vst [vmem:[#allocation7 + $0x120] sm:$0xff] %v1161_v31  ;;  %v1115_v34 = vpack.c.bf16 %v310_v32, %v308_v26  ;;  %v1163_v35 = vpack.c.bf16 %v430_v33, %v428_v27 }
 0x123   :  { %v1513_v11 = vrot.slane %v1470_v13, %v136_v22 }
 0x124   :  { %945 = vst [vmem:[#allocation7 + $0xc] sm:$0xff] %v1115_v34  ;;  %993 = vst [vmem:[#allocation7 + $0x12c] sm:$0xff] %v1163_v35  ;;  %v313_v36 = vpop.f32.mrb[4].mxu0  ;;  %v433_v37 = vpop.f32.mrb[4].mxu1 }
 0x125   :  { %v314_v38 = vadd.f32 %v313_v36, %v1474_v15  ;;  %v434_v39 = vadd.f32 %v433_v37, %v1474_v15  ;;  %v315_v40 = vpop.f32.mrb[5].mxu0  ;;  %v435_v41 = vpop.f32.mrb[5].mxu1 }
 0x126   :  { %v316_v42 = vadd.f32 %v315_v40, %v1477_v0  ;;  %v436_v43 = vadd.f32 %v435_v41, %v1477_v0  ;;  %v317_v44 = vpop.f32.mrb[6].mxu0  ;;  %v437_v45 = vpop.f32.mrb[6].mxu1 }
 0x127   :  { %v318_v46 = vadd.f32 %v317_v44, %v1474_v15  ;;  %v438_v47 = vadd.f32 %v437_v45, %v1474_v15  ;;  %v319_v48 = vpop.f32.mrb[7].mxu0  ;;  %v439_v49 = vpop.f32.mrb[7].mxu1 }
 0x128   :  { %v1117_v50 = vpack.c.bf16 %v316_v42, %v314_v38  ;;  %v1165_v51 = vpack.c.bf16 %v436_v43, %v434_v39  ;;  %v320_v52 = vadd.f32 %v319_v48, %v1477_v0  ;;  %v440_v53 = vadd.f32 %v439_v49, %v1477_v0 }
 0x12a   :  { %947 = vst [vmem:[#allocation7 + $0x18] sm:$0xff] %v1117_v50  ;;  %995 = vst [vmem:[#allocation7 + $0x138] sm:$0xff] %v1165_v51  ;;  %v1119_v54 = vpack.c.bf16 %v320_v52, %v318_v46  ;;  %v1167_v55 = vpack.c.bf16 %v440_v53, %v438_v47 }
 0x12c   :  { %949 = vst [vmem:[#allocation7 + $0x24] sm:$0xff] %v1119_v54  ;;  %997 = vst [vmem:[#allocation7 + $0x144] sm:$0xff] %v1167_v55  ;;  %v323_v56 = vpop.f32.mrb[8].mxu0  ;;  %v443_v57 = vpop.f32.mrb[8].mxu1 }
 0x12d   :  { %v324_v58 = vadd.f32 %v323_v56, %v1474_v15  ;;  %v444_v59 = vadd.f32 %v443_v57, %v1474_v15  ;;  %v325_v60 = vpop.f32.mrb[9].mxu0  ;;  %v445_v61 = vpop.f32.mrb[9].mxu1 }
 0x12e   :  { %v326_v62 = vadd.f32 %v325_v60, %v1477_v0  ;;  %v446_v63 = vadd.f32 %v445_v61, %v1477_v0  ;;  %v327_v1 = vpop.f32.mrb[10].mxu0  ;;  %v447_v2 = vpop.f32.mrb[10].mxu1 }
 0x12f   :  { %v328_v3 = vadd.f32 %v327_v1, %v1474_v15  ;;  %v448_v4 = vadd.f32 %v447_v2, %v1474_v15  ;;  %v329_v5 = vpop.f32.mrb[11].mxu0  ;;  %v449_v6 = vpop.f32.mrb[11].mxu1 }
 0x130   :  { %v1121_v7 = vpack.c.bf16 %v326_v62, %v324_v58  ;;  %v1169_v8 = vpack.c.bf16 %v446_v63, %v444_v59  ;;  %v330_v9 = vadd.f32 %v329_v5, %v1477_v0  ;;  %v450_v10 = vadd.f32 %v449_v6, %v1477_v0 }
 0x132   :  { %951 = vst [vmem:[#allocation7 + $0x30] sm:$0xff] %v1121_v7  ;;  %999 = vst [vmem:[#allocation7 + $0x150] sm:$0xff] %v1169_v8  ;;  %v1123_v12 = vpack.c.bf16 %v330_v9, %v328_v3  ;;  %v1171_v14 = vpack.c.bf16 %v450_v10, %v448_v4 }
 0x134   :  { %953 = vst [vmem:[#allocation7 + $0x3c] sm:$0xff] %v1123_v12  ;;  %1001 = vst [vmem:[#allocation7 + $0x15c] sm:$0xff] %v1171_v14  ;;  %v333_v16 = vpop.f32.mrb[12].mxu0  ;;  %v453_v17 = vpop.f32.mrb[12].mxu1 }
 0x135   :  { %v334_v18 = vadd.f32 %v333_v16, %v1474_v15  ;;  %v454_v19 = vadd.f32 %v453_v17, %v1474_v15  ;;  %v335_v20 = vpop.f32.mrb[13].mxu0  ;;  %v455_v21 = vpop.f32.mrb[13].mxu1 }
 0x136   :  { %v336_v23 = vadd.f32 %v335_v20, %v1477_v0  ;;  %v456_v24 = vadd.f32 %v455_v21, %v1477_v0  ;;  %v337_v25 = vpop.f32.mrb[14].mxu0  ;;  %v457_v26 = vpop.f32.mrb[14].mxu1 }
 0x137   :  { %v338_v27 = vadd.f32 %v337_v25, %v1474_v15  ;;  %v458_v28 = vadd.f32 %v457_v26, %v1474_v15  ;;  %v339_v29 = vpop.f32.mrb[15].mxu0  ;;  %v459_v30 = vpop.f32.mrb[15].mxu1 }
 0x138   :  { %v1125_v31 = vpack.c.bf16 %v336_v23, %v334_v18  ;;  %v1173_v32 = vpack.c.bf16 %v456_v24, %v454_v19  ;;  %v340_v33 = vadd.f32 %v339_v29, %v1477_v0  ;;  %v460_v34 = vadd.f32 %v459_v30, %v1477_v0 }
 0x13a   :  { %955 = vst [vmem:[#allocation7 + $0x48] sm:$0xff] %v1125_v31  ;;  %1003 = vst [vmem:[#allocation7 + $0x168] sm:$0xff] %v1173_v32  ;;  %v1127_v35 = vpack.c.bf16 %v340_v33, %v338_v27  ;;  %v1175_v36 = vpack.c.bf16 %v460_v34, %v458_v28 }
 0x13c   :  { %957 = vst [vmem:[#allocation7 + $0x54] sm:$0xff] %v1127_v35  ;;  %1005 = vst [vmem:[#allocation7 + $0x174] sm:$0xff] %v1175_v36  ;;  %v343_v37 = vpop.f32.mrb[16].mxu0  ;;  %v1219_v38 = vpop.f32.mrb[16].mxu1 }
 0x13d   :  { %v344_v39 = vadd.f32 %v343_v37, %v1474_v15  ;;  %v505_v40 = vadd.f32 %v1219_v38, %v1513_v11  ;;  %v345_v41 = vpop.f32.mrb[17].mxu0  ;;  %v496_v42 = vpop.f32.mrb[17].mxu1 }
 0x13e   :  { %v346_v43 = vadd.f32 %v345_v41, %v1477_v0  ;;  %v497_v44 = vadd.f32 %v496_v42, %v1513_v11  ;;  %v347_v13 = vpop.f32.mrb[18].mxu0  ;;  %v1220_v45 = vpop.f32.mrb[18].mxu1 }
 0x13f   :  { %v1118_v46 = vpack.c.bf16 %v505_v40, %v505_v40  ;;  %v348_v47 = vadd.f32 %v347_v13, %v1474_v15  ;;  %v508_v48 = vadd.f32 %v1220_v45, %v1513_v11  ;;  %v349_v49 = vpop.f32.mrb[19].mxu0  ;;  %v499_v50 = vpop.f32.mrb[19].mxu1 }
 0x140   :  { %v1129_v51 = vpack.c.bf16 %v346_v43, %v344_v39  ;;  %v1114_v52 = vpack.c.bf16 %v497_v44, %v497_v44  ;;  %v350_v53 = vadd.f32 %v349_v49, %v1477_v0  ;;  %v500_v54 = vadd.f32 %v499_v50, %v1513_v11 }
 0x141   :  { %948 = vst [vmem:[#allocation7 + $0x20] sm:$0xf] %v1118_v46  ;;  %v1120_v55 = vpack.c.bf16 %v508_v48, %v508_v48 }
 0x142   :  { %959 = vst [vmem:[#allocation7 + $0x60] sm:$0xff] %v1129_v51  ;;  %944 = vst [vmem:[#allocation7 + $0x8] sm:$0xf] %v1114_v52  ;;  %v1131_v56 = vpack.c.bf16 %v350_v53, %v348_v47  ;;  %v1116_v57 = vpack.c.bf16 %v500_v54, %v500_v54 }
 0x143   :  { %950 = vst [vmem:[#allocation7 + $0x2c] sm:$0xf] %v1120_v55 }
 0x144   :  { %961 = vst [vmem:[#allocation7 + $0x6c] sm:$0xff] %v1131_v56  ;;  %946 = vst [vmem:[#allocation7 + $0x14] sm:$0xf] %v1116_v57  ;;  %v353_v58 = vpop.f32.mrb[20].mxu0  ;;  %v1223_v59 = vpop.f32.mrb[20].mxu1 }
 0x145   :  { %v354_v60 = vadd.f32 %v353_v58, %v1474_v15  ;;  %v521_v61 = vadd.f32 %v1223_v59, %v1513_v11  ;;  %v355_v62 = vpop.f32.mrb[21].mxu0  ;;  %v512_v63 = vpop.f32.mrb[21].mxu1 }
 0x146   :  { %v356_v1 = vadd.f32 %v355_v62, %v1477_v0  ;;  %v513_v2 = vadd.f32 %v512_v63, %v1513_v11  ;;  %v357_v3 = vpop.f32.mrb[22].mxu0  ;;  %v1224_v4 = vpop.f32.mrb[22].mxu1 }
 0x147   :  { %v1126_v5 = vpack.c.bf16 %v521_v61, %v521_v61  ;;  %v358_v6 = vadd.f32 %v357_v3, %v1474_v15  ;;  %v524_v7 = vadd.f32 %v1224_v4, %v1513_v11  ;;  %v359_v8 = vpop.f32.mrb[23].mxu0  ;;  %v515_v9 = vpop.f32.mrb[23].mxu1 }
 0x148   :  { %v1133_v10 = vpack.c.bf16 %v356_v1, %v354_v60  ;;  %v1122_v12 = vpack.c.bf16 %v513_v2, %v513_v2  ;;  %v360_v14 = vadd.f32 %v359_v8, %v1477_v0  ;;  %v516_v16 = vadd.f32 %v515_v9, %v1513_v11 }
 0x149   :  { %956 = vst [vmem:[#allocation7 + $0x50] sm:$0xf] %v1126_v5  ;;  %v1128_v17 = vpack.c.bf16 %v524_v7, %v524_v7 }
 0x14a   :  { %963 = vst [vmem:[#allocation7 + $0x78] sm:$0xff] %v1133_v10  ;;  %952 = vst [vmem:[#allocation7 + $0x38] sm:$0xf] %v1122_v12  ;;  %v1135_v18 = vpack.c.bf16 %v360_v14, %v358_v6  ;;  %v1124_v19 = vpack.c.bf16 %v516_v16, %v516_v16 }
 0x14b   :  { %958 = vst [vmem:[#allocation7 + $0x5c] sm:$0xf] %v1128_v17 }
 0x14c   :  { %965 = vst [vmem:[#allocation7 + $0x84] sm:$0xff] %v1135_v18  ;;  %954 = vst [vmem:[#allocation7 + $0x44] sm:$0xf] %v1124_v19  ;;  %v363_v20 = vpop.f32.mrb[24].mxu0  ;;  %v1227_v21 = vpop.f32.mrb[24].mxu1 }
 0x14d   :  { %v364_v22 = vadd.f32 %v363_v20, %v1474_v15  ;;  %v537_v23 = vadd.f32 %v1227_v21, %v1513_v11  ;;  %v365_v24 = vpop.f32.mrb[25].mxu0  ;;  %v528_v25 = vpop.f32.mrb[25].mxu1 }
 0x14e   :  { %v366_v26 = vadd.f32 %v365_v24, %v1477_v0  ;;  %v529_v27 = vadd.f32 %v528_v25, %v1513_v11  ;;  %v367_v28 = vpop.f32.mrb[26].mxu0  ;;  %v1228_v29 = vpop.f32.mrb[26].mxu1 }
 0x14f   :  { %v1134_v30 = vpack.c.bf16 %v537_v23, %v537_v23  ;;  %v368_v31 = vadd.f32 %v367_v28, %v1474_v15  ;;  %v540_v32 = vadd.f32 %v1228_v29, %v1513_v11  ;;  %v369_v33 = vpop.f32.mrb[27].mxu0  ;;  %v531_v34 = vpop.f32.mrb[27].mxu1 }
 0x150   :  { %v1137_v35 = vpack.c.bf16 %v366_v26, %v364_v22  ;;  %v1130_v36 = vpack.c.bf16 %v529_v27, %v529_v27  ;;  %v370_v37 = vadd.f32 %v369_v33, %v1477_v0  ;;  %v532_v38 = vadd.f32 %v531_v34, %v1513_v11 }
 0x151   :  { %964 = vst [vmem:[#allocation7 + $0x80] sm:$0xf] %v1134_v30  ;;  %v1136_v39 = vpack.c.bf16 %v540_v32, %v540_v32 }
 0x152   :  { %967 = vst [vmem:[#allocation7 + $0x90] sm:$0xff] %v1137_v35  ;;  %960 = vst [vmem:[#allocation7 + $0x68] sm:$0xf] %v1130_v36  ;;  %v1139_v40 = vpack.c.bf16 %v370_v37, %v368_v31  ;;  %v1132_v41 = vpack.c.bf16 %v532_v38, %v532_v38 }
 0x153   :  { %966 = vst [vmem:[#allocation7 + $0x8c] sm:$0xf] %v1136_v39 }
 0x154   :  { %969 = vst [vmem:[#allocation7 + $0x9c] sm:$0xff] %v1139_v40  ;;  %962 = vst [vmem:[#allocation7 + $0x74] sm:$0xf] %v1132_v41  ;;  %v373_v42 = vpop.f32.mrb[28].mxu0  ;;  %v1231_v43 = vpop.f32.mrb[28].mxu1 }
 0x155   :  { %v374_v44 = vadd.f32 %v373_v42, %v1474_v15  ;;  %v553_v13 = vadd.f32 %v1231_v43, %v1513_v11  ;;  %v375_v45 = vpop.f32.mrb[29].mxu0  ;;  %v544_v46 = vpop.f32.mrb[29].mxu1 }
 0x156   :  { %v376_v47 = vadd.f32 %v375_v45, %v1477_v0  ;;  %v545_v48 = vadd.f32 %v544_v46, %v1513_v11  ;;  %v377_v49 = vpop.f32.mrb[30].mxu0  ;;  %v1232_v50 = vpop.f32.mrb[30].mxu1 }
 0x157   :  { %v1142_v51 = vpack.c.bf16 %v553_v13, %v553_v13  ;;  %v378_v52 = vadd.f32 %v377_v49, %v1474_v15  ;;  %v556_v53 = vadd.f32 %v1232_v50, %v1513_v11  ;;  %v379_v54 = vpop.f32.mrb[31].mxu0  ;;  %v547_v55 = vpop.f32.mrb[31].mxu1 }
 0x158   :  { %v1141_v56 = vpack.c.bf16 %v376_v47, %v374_v44  ;;  %v1138_v57 = vpack.c.bf16 %v545_v48, %v545_v48  ;;  %v380_v58 = vadd.f32 %v379_v54, %v1477_v0  ;;  %v548_v59 = vadd.f32 %v547_v55, %v1513_v11 }
 0x159   :  { %972 = vst [vmem:[#allocation7 + $0xb0] sm:$0xf] %v1142_v51  ;;  %v1144_v60 = vpack.c.bf16 %v556_v53, %v556_v53 }
 0x15a   :  { %971 = vst [vmem:[#allocation7 + $0xa8] sm:$0xff] %v1141_v56  ;;  %968 = vst [vmem:[#allocation7 + $0x98] sm:$0xf] %v1138_v57  ;;  %v1143_v61 = vpack.c.bf16 %v380_v58, %v378_v52  ;;  %v1140_v62 = vpack.c.bf16 %v548_v59, %v548_v59 }
 0x15b   :  { %974 = vst [vmem:[#allocation7 + $0xbc] sm:$0xf] %v1144_v60 }
 0x15c   :  { %973 = vst [vmem:[#allocation7 + $0xb4] sm:$0xff] %v1143_v61  ;;  %970 = vst [vmem:[#allocation7 + $0xa4] sm:$0xf] %v1140_v62  ;;  %v383_v63 = vpop.f32.mrb[32].mxu0  ;;  %v1235_v1 = vpop.f32.mrb[32].mxu1 }
 0x15d   :  { %v384_v2 = vadd.f32 %v383_v63, %v1474_v15  ;;  %v569_v3 = vadd.f32 %v1235_v1, %v1513_v11  ;;  %v385_v4 = vpop.f32.mrb[33].mxu0  ;;  %v560_v5 = vpop.f32.mrb[33].mxu1 }
 0x15e   :  { %v386_v6 = vadd.f32 %v385_v4, %v1477_v0  ;;  %v561_v7 = vadd.f32 %v560_v5, %v1513_v11  ;;  %v387_v8 = vpop.f32.mrb[34].mxu0  ;;  %v1236_v9 = vpop.f32.mrb[34].mxu1 }
 0x15f   :  { %v1150_v10 = vpack.c.bf16 %v569_v3, %v569_v3  ;;  %v388_v12 = vadd.f32 %v387_v8, %v1474_v15  ;;  %v572_v14 = vadd.f32 %v1236_v9, %v1513_v11  ;;  %v389_v16 = vpop.f32.mrb[35].mxu0  ;;  %v563_v17 = vpop.f32.mrb[35].mxu1 }
 0x160   :  { %v1145_v18 = vpack.c.bf16 %v386_v6, %v384_v2  ;;  %v1146_v19 = vpack.c.bf16 %v561_v7, %v561_v7  ;;  %v390_v20 = vadd.f32 %v389_v16, %v1477_v0  ;;  %v564_v21 = vadd.f32 %v563_v17, %v1513_v11 }
 0x161   :  { %980 = vst [vmem:[#allocation7 + $0xe0] sm:$0xf] %v1150_v10  ;;  %v1152_v22 = vpack.c.bf16 %v572_v14, %v572_v14 }
 0x162   :  { %975 = vst [vmem:[#allocation7 + $0xc0] sm:$0xff] %v1145_v18  ;;  %976 = vst [vmem:[#allocation7 + $0xc8] sm:$0xf] %v1146_v19  ;;  %v1147_v23 = vpack.c.bf16 %v390_v20, %v388_v12  ;;  %v1148_v24 = vpack.c.bf16 %v564_v21, %v564_v21 }
 0x163   :  { %982 = vst [vmem:[#allocation7 + $0xec] sm:$0xf] %v1152_v22 }
 0x164   :  { %977 = vst [vmem:[#allocation7 + $0xcc] sm:$0xff] %v1147_v23  ;;  %978 = vst [vmem:[#allocation7 + $0xd4] sm:$0xf] %v1148_v24  ;;  %v393_v25 = vpop.f32.mrb[36].mxu0  ;;  %v1239_v26 = vpop.f32.mrb[36].mxu1 }
 0x165   :  { %v394_v27 = vadd.f32 %v393_v25, %v1474_v15  ;;  %v585_v28 = vadd.f32 %v1239_v26, %v1513_v11  ;;  %v395_v29 = vpop.f32.mrb[37].mxu0  ;;  %v576_v30 = vpop.f32.mrb[37].mxu1 }
 0x166   :  { %v396_v31 = vadd.f32 %v395_v29, %v1477_v0  ;;  %v577_v32 = vadd.f32 %v576_v30, %v1513_v11  ;;  %v397_v33 = vpop.f32.mrb[38].mxu0  ;;  %v1240_v34 = vpop.f32.mrb[38].mxu1 }
 0x167   :  { %v1158_v35 = vpack.c.bf16 %v585_v28, %v585_v28  ;;  %v398_v36 = vadd.f32 %v397_v33, %v1474_v15  ;;  %v588_v37 = vadd.f32 %v1240_v34, %v1513_v11  ;;  %v399_v38 = vpop.f32.mrb[39].mxu0  ;;  %v579_v39 = vpop.f32.mrb[39].mxu1 }
 0x168   :  { %v1149_v40 = vpack.c.bf16 %v396_v31, %v394_v27  ;;  %v1154_v41 = vpack.c.bf16 %v577_v32, %v577_v32  ;;  %v400_v42 = vadd.f32 %v399_v38, %v1477_v0  ;;  %v580_v43 = vadd.f32 %v579_v39, %v1513_v11 }
 0x169   :  { %988 = vst [vmem:[#allocation7 + $0x110] sm:$0xf] %v1158_v35  ;;  %v1160_v44 = vpack.c.bf16 %v588_v37, %v588_v37 }
 0x16a   :  { %979 = vst [vmem:[#allocation7 + $0xd8] sm:$0xff] %v1149_v40  ;;  %984 = vst [vmem:[#allocation7 + $0xf8] sm:$0xf] %v1154_v41  ;;  %v1151_v13 = vpack.c.bf16 %v400_v42, %v398_v36  ;;  %v1156_v45 = vpack.c.bf16 %v580_v43, %v580_v43 }
 0x16b   :  { %990 = vst [vmem:[#allocation7 + $0x11c] sm:$0xf] %v1160_v44 }
 0x16c   :  { %981 = vst [vmem:[#allocation7 + $0xe4] sm:$0xff] %v1151_v13  ;;  %986 = vst [vmem:[#allocation7 + $0x104] sm:$0xf] %v1156_v45  ;;  %v403_v46 = vpop.f32.mrb[40].mxu0  ;;  %v1243_v47 = vpop.f32.mrb[40].mxu1 }
 0x16d   :  { %v404_v48 = vadd.f32 %v403_v46, %v1474_v15  ;;  %v601_v49 = vadd.f32 %v1243_v47, %v1513_v11  ;;  %v405_v50 = vpop.f32.mrb[41].mxu0  ;;  %v592_v51 = vpop.f32.mrb[41].mxu1 }
 0x16e   :  { %v406_v52 = vadd.f32 %v405_v50, %v1477_v0  ;;  %v593_v53 = vadd.f32 %v592_v51, %v1513_v11  ;;  %v407_v54 = vpop.f32.mrb[42].mxu0  ;;  %v1244_v55 = vpop.f32.mrb[42].mxu1 }
 0x16f   :  { %v1166_v56 = vpack.c.bf16 %v601_v49, %v601_v49  ;;  %v408_v57 = vadd.f32 %v407_v54, %v1474_v15  ;;  %v604_v58 = vadd.f32 %v1244_v55, %v1513_v11  ;;  %v409_v59 = vpop.f32.mrb[43].mxu0  ;;  %v595_v60 = vpop.f32.mrb[43].mxu1 }
 0x170   :  { %v1153_v61 = vpack.c.bf16 %v406_v52, %v404_v48  ;;  %v1162_v62 = vpack.c.bf16 %v593_v53, %v593_v53  ;;  %v410_v63 = vadd.f32 %v409_v59, %v1477_v0  ;;  %v596_v1 = vadd.f32 %v595_v60, %v1513_v11 }
 0x171   :  { %996 = vst [vmem:[#allocation7 + $0x140] sm:$0xf] %v1166_v56  ;;  %v1168_v2 = vpack.c.bf16 %v604_v58, %v604_v58 }
 0x172   :  { %983 = vst [vmem:[#allocation7 + $0xf0] sm:$0xff] %v1153_v61  ;;  %992 = vst [vmem:[#allocation7 + $0x128] sm:$0xf] %v1162_v62  ;;  %v1155_v3 = vpack.c.bf16 %v410_v63, %v408_v57  ;;  %v1164_v4 = vpack.c.bf16 %v596_v1, %v596_v1 }
 0x173   :  { %998 = vst [vmem:[#allocation7 + $0x14c] sm:$0xf] %v1168_v2 }
 0x174   :  { %985 = vst [vmem:[#allocation7 + $0xfc] sm:$0xff] %v1155_v3  ;;  %994 = vst [vmem:[#allocation7 + $0x134] sm:$0xf] %v1164_v4  ;;  %v413_v5 = vpop.f32.mrb[44].mxu0  ;;  %v1247_v6 = vpop.f32.mrb[44].mxu1 }
 0x175   :  { %v414_v7 = vadd.f32 %v413_v5, %v1474_v15  ;;  %v617_v8 = vadd.f32 %v1247_v6, %v1513_v11  ;;  %v415_v9 = vpop.f32.mrb[45].mxu0  ;;  %v608_v10 = vpop.f32.mrb[45].mxu1 }
 0x176   :  { %v416_v12 = vadd.f32 %v415_v9, %v1477_v0  ;;  %v609_v14 = vadd.f32 %v608_v10, %v1513_v11  ;;  %v417_v16 = vpop.f32.mrb[46].mxu0  ;;  %v1248_v17 = vpop.f32.mrb[46].mxu1 }
 0x177   :  { %v1174_v18 = vpack.c.bf16 %v617_v8, %v617_v8  ;;  %v418_v19 = vadd.f32 %v417_v16, %v1474_v15  ;;  %v620_v20 = vadd.f32 %v1248_v17, %v1513_v11  ;;  %v419_v21 = vpop.f32.mrb[47].mxu0  ;;  %v611_v22 = vpop.f32.mrb[47].mxu1 }
 0x178   :  { %v1157_v23 = vpack.c.bf16 %v416_v12, %v414_v7  ;;  %v1170_v24 = vpack.c.bf16 %v609_v14, %v609_v14  ;;  %v420_v25 = vadd.f32 %v419_v21, %v1477_v0  ;;  %v612_v26 = vadd.f32 %v611_v22, %v1513_v11 }
 0x179   :  { %1004 = vst [vmem:[#allocation7 + $0x170] sm:$0xf] %v1174_v18  ;;  %v1176_v27 = vpack.c.bf16 %v620_v20, %v620_v20 }
 0x17a   :  { %987 = vst [vmem:[#allocation7 + $0x108] sm:$0xff] %v1157_v23  ;;  %1000 = vst [vmem:[#allocation7 + $0x158] sm:$0xf] %v1170_v24  ;;  %v1159_v28 = vpack.c.bf16 %v420_v25, %v418_v19  ;;  %v1172_v29 = vpack.c.bf16 %v612_v26, %v612_v26 }
 0x17b   :  { %1006 = vst [vmem:[#allocation7 + $0x17c] sm:$0xf] %v1176_v27 }
 0x17c   :  { %989 = vst [vmem:[#allocation7 + $0x114] sm:$0xff] %v1159_v28  ;;  %1002 = vst [vmem:[#allocation7 + $0x164] sm:$0xf] %v1172_v29 }
 0x17d   :  { %1360 = shalt.err (!%p1357_p6)
}
 0x17e   :  { %s1361_s17 = scalar_lea.hbm %s1597_s3, 6144 }
 0x17f   :  { %p1362_p7 = scmp.ne.s32.totalorder %s1597_s3, %s1361_s17  ;;  %p1365_p8 = scmp.lt.u32.totalorder %s1361_s17, %s1597_s3 }
 0x181   :  { %p1367_p9 = pnand %p1365_p8, %p1362_p7 }
 0x183   :  { %1370 = shalt.err (!%p1367_p9)
}
 0x184   :  { %1018 = dma.vmem_to_hbm [thread:$0]  %s1013_s13, 6144, %s1597_s3, [#allocation4], %s1381_s0, %s1381_s0, %s1382_s9  }
 0x185   :  { %1375 = dma.done.wait [#allocation4], 6144  }
 0x186   :  { %1376 = vsyncadd [#allocation4], 4294961152 }
 0x187   :  { %1022 = vsyncpa [#allocation3], 1 }
 0x188   :  { %1023 = vsyncpa [#allocation6], 1 }
 0x189   :  { %1024 = vsyncpa [#allocation4], 1 }

</bundles_post_ra>
